<compile_context>
chip_gen: v5e
topology: v5e:2x2
jax: 0.10.0
libtpu: 0.0.40
codegen_flags: <defaults>
</compile_context>

<pallas_src>
import functools
import math

import jax
import jax.numpy as jnp
from jax import lax
from jax.experimental import pallas as pl
from jax.experimental.pallas import tpu as pltpu


def _round_up(a: int, b: int) -> int:
    return (a + b - 1) // b * b


def _choose_row_tile(rows: int, map_units: int, row_tile: int) -> int:
    """Row tile: multiple of lcm(M, 8); ~2 grid steps for small problems (v7x)."""
    lcm = map_units * 8 // math.gcd(map_units, 8)
    if rows >= 2 * row_tile:
        return max((row_tile // lcm) * lcm, lcm)
    return max(_round_up(-(-rows // 2), lcm), lcm)


def _rnn_cell_kernel(x_ref, h_ref, wi_ref, wh_ref, b_ref, out_ref, *, bias_reps):
    """One grid step = one row tile of the flattened (batch*map_units) dimension.

    x_ref  : (TM, I)   input features for this row tile
    h_ref  : (TM, H)   previous hidden state for this row tile
    wi_ref : (H, I)    input weight (resident, constant block)
    wh_ref : (H, H)    hidden weight (resident, constant block)
    b_ref  : (M, H)    b_i + b_h   (resident, tiled in-kernel across the TM rows)
    out_ref: (TM, H)   next hidden state
    """
    nt = (((1,), (1,)), ((), ()))  # contract last dims: x @ w.T on the MXU
    acc = lax.dot_general(x_ref[...], wi_ref[...], nt,
                          preferred_element_type=jnp.float32)
    acc = acc + lax.dot_general(h_ref[...], wh_ref[...], nt,
                                preferred_element_type=jnp.float32)
    bias = jnp.tile(b_ref[...].astype(jnp.float32), (bias_reps, 1))  # (TM, H)
    out_ref[...] = jnp.tanh(acc + bias).astype(out_ref.dtype)


def _rnn_cell_kernel_no_h(x_ref, wi_ref, b_ref, out_ref, *, bias_reps):
    """Initial-state path: h_prev == 0, so skip the w_h matmul and the h stream."""
    nt = (((1,), (1,)), ((), ()))
    acc = lax.dot_general(x_ref[...], wi_ref[...], nt,
                          preferred_element_type=jnp.float32)
    bias = jnp.tile(b_ref[...].astype(jnp.float32), (bias_reps, 1))
    out_ref[...] = jnp.tanh(acc + bias).astype(out_ref.dtype)


@functools.partial(jax.jit, static_argnames=("row_tile", "compute_dtype"))
def rnn_cell_forward(x, h_prev, w_i, w_h, b_i, b_h, *, row_tile=512,
                     compute_dtype=None):
    """Pallas-backed RNNCell forward.

    x      : (B, M, I) or (M, I)
    h_prev : (B, M, H) / (M, H) or None (defaults to zeros, as in the module)
    w_i    : (H, I)
    w_h    : (H, H)
    b_i    : (M, H)
    b_h    : (M, H)
    compute_dtype : optional matmul-operand dtype (e.g. jnp.bfloat16); accumulate,
                    bias add and tanh stay in f32, output keeps x.dtype.
    returns: (B, M, H)  (or (M, H) if x was unbatched)
    """
    squeeze = x.ndim == 2
    if squeeze:
        x = x[None]
        if h_prev is not None:
            h_prev = h_prev[None]

    B, M, I = x.shape
    H = w_i.shape[0]
    out_dtype = x.dtype
    cdt = compute_dtype if compute_dtype is not None else x.dtype

    R = B * M
    TM = _choose_row_tile(R, M, row_tile)
    Rp = _round_up(R, TM)
    grid = Rp // TM
    bias_reps = TM // M

    # Tiny per-call prep: (M, H) bias merge; the heavy weight stacking of the old
    # version is gone entirely (weights are consumed in their native layout).
    bias = (b_i + b_h).astype(jnp.float32)

    x2 = x.reshape(R, I).astype(cdt)
    if Rp != R:
        x2 = jnp.pad(x2, ((0, Rp - R), (0, 0)))
    wi = w_i.astype(cdt)

    itm = jnp.dtype(cdt).itemsize
    out_itm = jnp.dtype(out_dtype).itemsize
    compiler_params = pltpu.CompilerParams(dimension_semantics=("parallel",))

    if h_prev is None:
        cost = pl.CostEstimate(
            flops=2 * Rp * I * H,
            transcendentals=Rp * H,
            bytes_accessed=Rp * I * itm + H * I * itm + M * H * 4 + Rp * H * out_itm)
        out = pl.pallas_call(
            functools.partial(_rnn_cell_kernel_no_h, bias_reps=bias_reps),
            out_shape=jax.ShapeDtypeStruct((Rp, H), out_dtype),
            grid_spec=pltpu.PrefetchScalarGridSpec(
                num_scalar_prefetch=0,
                grid=(grid,),
                in_specs=[
                    pl.BlockSpec((TM, I), lambda i: (i, 0)),   # x row tile
                    pl.BlockSpec((H, I), lambda i: (0, 0)),    # w_i (resident)
                    pl.BlockSpec((M, H), lambda i: (0, 0)),    # bias (resident)
                ],
                out_specs=pl.BlockSpec((TM, H), lambda i: (i, 0)),
            ),
            compiler_params=compiler_params,
            cost_estimate=cost,
        )(x2, wi, bias)
    else:
        h2 = h_prev.reshape(R, H).astype(cdt)
        if Rp != R:
            h2 = jnp.pad(h2, ((0, Rp - R), (0, 0)))
        wh = w_h.astype(cdt)
        cost = pl.CostEstimate(
            flops=2 * Rp * (I + H) * H,
            transcendentals=Rp * H,
            bytes_accessed=(Rp * (I + H) * itm + (H * I + H * H) * itm
                            + M * H * 4 + Rp * H * out_itm))
        out = pl.pallas_call(
            functools.partial(_rnn_cell_kernel, bias_reps=bias_reps),
            out_shape=jax.ShapeDtypeStruct((Rp, H), out_dtype),
            grid_spec=pltpu.PrefetchScalarGridSpec(
                num_scalar_prefetch=0,
                grid=(grid,),
                in_specs=[
                    pl.BlockSpec((TM, I), lambda i: (i, 0)),   # x row tile
                    pl.BlockSpec((TM, H), lambda i: (i, 0)),   # h_prev row tile
                    pl.BlockSpec((H, I), lambda i: (0, 0)),    # w_i (resident)
                    pl.BlockSpec((H, H), lambda i: (0, 0)),    # w_h (resident)
                    pl.BlockSpec((M, H), lambda i: (0, 0)),    # bias (resident)
                ],
                out_specs=pl.BlockSpec((TM, H), lambda i: (i, 0)),
            ),
            compiler_params=compiler_params,
            cost_estimate=cost,
        )(x2, h2, wi, wh, bias)

    h_next = (out[:R] if Rp != R else out).reshape(B, M, H)
    if squeeze:
        h_next = h_next[0]
    return h_next


def rnn_cell_reference(x, h_prev, w_i, w_h, b_i, b_h):
    """Pure-JAX reference matching the PyTorch semantics exactly."""
    y = jnp.einsum("hi,bmi->bmh", w_i, x) + jnp.einsum("hk,bmk->bmh", w_h, h_prev)
    return jnp.tanh(y + b_i + b_h)


if __name__ == "__main__":
    # Small, TPU-friendly shapes consistent with the module's forward.
    batch_size = 2
    map_units = 16
    input_size = 8
    hidden_size = 32
    dtype = jnp.float32

    key = jax.random.PRNGKey(0)
    kx, kh, kwi, kwh, kbi, kbh, kx2, kh2 = jax.random.split(key, 8)

    bound_i = 1.0 / (input_size ** 0.5)
    bound_h = 1.0 / (hidden_size ** 0.5)
    w_i = jax.random.uniform(kwi, (hidden_size, input_size), dtype,
                             minval=-bound_i, maxval=bound_i)
    w_h = jax.random.uniform(kwh, (hidden_size, hidden_size), dtype,
                             minval=-bound_h, maxval=bound_h)
    b_i = jax.random.uniform(kbi, (map_units, hidden_size), dtype,
                             minval=-bound_i, maxval=bound_i)
    b_h = jax.random.uniform(kbh, (map_units, hidden_size), dtype,
                             minval=-bound_h, maxval=bound_h)

    x = jax.random.normal(kx, (batch_size, map_units, input_size), dtype)
    h_prev = jax.random.normal(kh, (batch_size, map_units, hidden_size), dtype)

    # Pallas kernel with a provided previous state.
    h_next = jax.block_until_ready(rnn_cell_forward(x, h_prev, w_i, w_h, b_i, b_h))

    # "state is None" path (skips the w_h matmul and the zeros-h stream).
    h_next0 = jax.block_until_ready(rnn_cell_forward(x, None, w_i, w_h, b_i, b_h))

    # Unbatched (2-D x) path, as supported by the module.
    h_unbatched = jax.block_until_ready(
        rnn_cell_forward(x[0], h_prev[0], w_i, w_h, b_i, b_h))

    # Larger batch to exercise the multi-tile row grid.
    big_batch = 40
    xb = jax.random.normal(kx2, (big_batch, map_units, input_size), dtype)
    hb = jax.random.normal(kh2, (big_batch, map_units, hidden_size), dtype)
    h_next_big = jax.block_until_ready(rnn_cell_forward(xb, hb, w_i, w_h, b_i, b_h))

    # bf16 matmul-operand path (f32 accumulate / bias / tanh), looser tolerance.
    h_bf16 = jax.block_until_ready(
        rnn_cell_forward(x, h_prev, w_i, w_h, b_i, b_h, compute_dtype=jnp.bfloat16))

    # Correctness checks against the pure-JAX reference.
    ref = rnn_cell_reference(x, h_prev, w_i, w_h, b_i, b_h)
    ref0 = rnn_cell_reference(x, jnp.zeros_like(h_prev), w_i, w_h, b_i, b_h)
    ref_big = rnn_cell_reference(xb, hb, w_i, w_h, b_i, b_h)

    assert h_next.shape == (batch_size, map_units, hidden_size)
    assert jnp.allclose(h_next, ref, atol=1e-5, rtol=1e-5)
    assert jnp.allclose(h_next0, ref0, atol=1e-5, rtol=1e-5)
    assert jnp.allclose(h_unbatched, ref[0], atol=1e-5, rtol=1e-5)
    assert jnp.allclose(h_next_big, ref_big, atol=1e-5, rtol=1e-5)
    assert jnp.allclose(h_bf16, ref, atol=5e-2, rtol=5e-2)

    print("KERNEL_OK")
</pallas_src>

<mosaic_0001>
module attributes {stable_mosaic.version = 11 : i64} {
  func.func @_rnn_cell_kernel(%arg0: i32, %arg1: memref<16x8xf32, #tpu.memory_space<vmem>>, %arg2: memref<16x32xf32, #tpu.memory_space<vmem>>, %arg3: memref<32x8xf32, #tpu.memory_space<vmem>>, %arg4: memref<32x32xf32, #tpu.memory_space<vmem>>, %arg5: memref<16x32xf32, #tpu.memory_space<vmem>>, %arg6: memref<16x32xf32, #tpu.memory_space<vmem>>) attributes {dimension_semantics = [#tpu.dimension_semantics<parallel>], iteration_bounds = array<i64: 2>, scalar_prefetch = 0 : i64, scratch_operands = 0 : i64, tpu.core_type = #tpu.core_type<tc>, window_params = [{transform_indices = @transform_0, window_bounds = array<i64: 16, 8>}, {transform_indices = @transform_1, window_bounds = array<i64: 16, 32>}, {pipeline_mode = #tpu.pipeline_mode<synchronous>, transform_indices = @transform_2, window_bounds = array<i64: 32, 8>}, {pipeline_mode = #tpu.pipeline_mode<synchronous>, transform_indices = @transform_3, window_bounds = array<i64: 32, 32>}, {pipeline_mode = #tpu.pipeline_mode<synchronous>, transform_indices = @transform_4, window_bounds = array<i64: 16, 32>}, {transform_indices = @transform_5, window_bounds = array<i64: 16, 32>}]} {
    %c0 = arith.constant 0 : index
    %c0_0 = arith.constant 0 : index
    %0 = vector.load %arg1[%c0, %c0_0] : memref<16x8xf32, #tpu.memory_space<vmem>>, vector<16x8xf32>
    %c0_1 = arith.constant 0 : index
    %c0_2 = arith.constant 0 : index
    %1 = vector.load %arg3[%c0_1, %c0_2] : memref<32x8xf32, #tpu.memory_space<vmem>>, vector<32x8xf32>
    %cst = arith.constant dense<0.000000e+00> : vector<16x32xf32>
    %2 = tpu.matmul %0, %1, %cst {dimension_numbers = #tpu.dot_dimension_numbers<[1], [1], [0], [0], [0, 0, 1, 0], [], []>} : vector<16x8xf32>, vector<32x8xf32>, vector<16x32xf32> -> vector<16x32xf32>
    %c0_3 = arith.constant 0 : index
    %c0_4 = arith.constant 0 : index
    %3 = vector.load %arg2[%c0_3, %c0_4] : memref<16x32xf32, #tpu.memory_space<vmem>>, vector<16x32xf32>
    %c0_5 = arith.constant 0 : index
    %c0_6 = arith.constant 0 : index
    %4 = vector.load %arg4[%c0_5, %c0_6] : memref<32x32xf32, #tpu.memory_space<vmem>>, vector<32x32xf32>
    %cst_7 = arith.constant dense<0.000000e+00> : vector<16x32xf32>
    %5 = tpu.matmul %3, %4, %cst_7 {dimension_numbers = #tpu.dot_dimension_numbers<[1], [1], [0], [0], [0, 0, 1, 0], [], []>} : vector<16x32xf32>, vector<32x32xf32>, vector<16x32xf32> -> vector<16x32xf32>
    %6 = arith.addf %2, %5 : vector<16x32xf32>
    %c0_8 = arith.constant 0 : index
    %c0_9 = arith.constant 0 : index
    %7 = vector.load %arg5[%c0_8, %c0_9] : memref<16x32xf32, #tpu.memory_space<vmem>>, vector<16x32xf32>
    %8 = arith.addf %6, %7 : vector<16x32xf32>
    %9 = math.tanh %8 : vector<16x32xf32>
    %c0_10 = arith.constant 0 : index
    %c0_11 = arith.constant 0 : index
    %10 = vector.load %arg6[%c0_10, %c0_11] : memref<16x32xf32, #tpu.memory_space<vmem>>, vector<16x32xf32>
    tpu.vector_store %arg6[%c0_10, %c0_11], %9 {strides = array<i32>} : memref<16x32xf32, #tpu.memory_space<vmem>>, vector<16x32xf32>,
    return
  }
  func.func @transform_0(%arg0: i32) -> (i32, i32) {
    %c0_i32 = arith.constant 0 : i32
    %c0_i32_0 = arith.constant 0 : i32
    return %arg0, %c0_i32 : i32, i32
  }
  func.func @transform_1(%arg0: i32) -> (i32, i32) {
    %c0_i32 = arith.constant 0 : i32
    %c0_i32_0 = arith.constant 0 : i32
    return %arg0, %c0_i32 : i32, i32
  }
  func.func @transform_2(%arg0: i32) -> (i32, i32) {
    %c0_i32 = arith.constant 0 : i32
    %c0_i32_0 = arith.constant 0 : i32
    %c0_i32_1 = arith.constant 0 : i32
    return %c0_i32, %c0_i32_0 : i32, i32
  }
  func.func @transform_3(%arg0: i32) -> (i32, i32) {
    %c0_i32 = arith.constant 0 : i32
    %c0_i32_0 = arith.constant 0 : i32
    %c0_i32_1 = arith.constant 0 : i32
    return %c0_i32, %c0_i32_0 : i32, i32
  }
  func.func @transform_4(%arg0: i32) -> (i32, i32) {
    %c0_i32 = arith.constant 0 : i32
    %c0_i32_0 = arith.constant 0 : i32
    %c0_i32_1 = arith.constant 0 : i32
    return %c0_i32, %c0_i32_0 : i32, i32
  }
  func.func @transform_5(%arg0: i32) -> (i32, i32) {
    %c0_i32 = arith.constant 0 : i32
    %c0_i32_0 = arith.constant 0 : i32
    return %arg0, %c0_i32 : i32, i32
  }
}

</mosaic_0001>

<bundles_post_ra>
// kernel: rnn_cell_forward.1
= control target key start
LH: loop header
LB: loop body
LE: loop exit
PB: predicated region body
PF: predicated region fallthrough
CT: control target
= control target key end

     0   :  { %10 = vsyncpa [#allocation3], 0  ;;  %s757_s0 = inlined_call_operand.vmem [shape: f32[32,8], index: 0, kind: input, shape index: {}]   ;;  %s758_s1 = inlined_call_operand.vmem [shape: f32[32,32], index: 1, kind: input, shape index: {}]   ;;  %s759_s2 = inlined_call_operand.vmem [shape: f32[32,8], index: 2, kind: input, shape index: {}]   ;;  %s760_s3 = inlined_call_operand.vmem [shape: f32[32,32], index: 3, kind: input, shape index: {}]   ;;  %s761_s4 = inlined_call_operand.vmem [shape: f32[16,32], index: 4, kind: input, shape index: {}]   ;;  %s762_s5 = inlined_call_operand.hbm [shape: f32[32,32], index: 5, kind: output, shape index: {}]  }
   0x1   :  { %12 = vsyncpa [#allocation3 + $0x1], 0  ;;  %s618_s18 = smov 0   ;;  %s620_s19 = smov 0  }
   0x2   :  { %s622_s20 = smov 0   ;;  %s624_s21 = smov 0  }
   0x3 LB: > { %s639_s22 = sadd.s32 4294967295, %s584_s21   ;;  %s442_s23 = sadd.s32 4294967294, %s584_s21   ;;  %s584_s21 = sphi %s624_s21, %s768_s21   ;;  %s580_s20 = sphi %s622_s20, %s767_s20   ;;  %s576_s19 = sphi %s620_s19, %s766_s19   ;;  %s572_s18 = sphi %s618_s18, %s765_s18  }
   0x4   : > { %s643_s24 = sadd.s32 1, %s584_s21   ;;  %s140_s25 = sadd.s32 1, %s580_s20 }
   0x5   : > { %s137_s26 = ssub.s32 %s584_s21, %s643_s24  ;;  %p150_p0 = scmp.ne.s32.totalorder %s580_s20, %s576_s19 }
   0x6   : > { %p138_p1 = scmp.eq.s32.totalorder %s137_s26, 0  ;;  %p151_p2 = scmp.eq.s32.totalorder %s639_s22, 1 }
   0x7   : > { %p156_p3 = scmp.ne.s32.totalorder %s576_s19, %s572_s18  ;;  %p157_p4 = scmp.eq.s32.totalorder %s442_s23, 1 }
   0x8   : > { %s654_s27 = scalar_select %p138_p1, %s580_s20, %s140_s25  }
   0x9   : > { %p656_p5 = por %p151_p2, %p150_p0  ;;  %p660_p6 = por %p157_p4, %p156_p3 }
   0xa   : > { %p445_p7 = scmp.ge.s32.totalorder %s584_s21, 1  ;;  %p202_p8 = scmp.lt.s32.totalorder %s584_s21, 3 }
   0xc   : > { %p203_p9 = pnand %p445_p7, %p202_p8 }
   0xd   : > { %s447_s9 = sshll.u32 (!%p203_p9), %s639_s22, 1  ;;  %s232_s15 = sand.u32 (!%p203_p9), 1, %s576_s19  }
   0xe   : > { %206 = sbr.rel (%p203_p9) target bundleno = 183 (0xb7), region = 40  ;;  %p236_p10 = scmp.lt.s32.totalorder (!%p203_p9), %s447_s9, 3 }
   0xf   : > { %s468_s25 = sshll.u32 (!%p203_p9), %s639_s22, 4  ;;  %s353_s22 = scalar_lea.sflag (!%p203_p9), [#allocation3], %s232_s15 }
  0x10   : > { %s364_s6 = scalar_lea.hbm (!%p203_p9), %s762_s5, %s468_s25  ;;  %s542_s14 = scalar_lea.hbm (!%p203_p9), %s762_s5, 32 }
  0x13   : > { %v259_v0 = vld [vmem:[%s760_s3 + $0x18] sm:$0xff]  ;;  %vm260_vm0 = vcmask 261120   ;;  %vm302_vm1 = vcmask 64512   ;;  %v258_v2 = vld [vmem:[%s760_s3 + $0x10] sm:$0xff]  ;;  %s770_s9 = smov (!%p236_p10, %s447_s9), 3  ;;  %v257_v4 = vld [vmem:[%s760_s3 + $0x8] sm:$0xff] }
  0x14   : > { %v253_v1 = vld [vmem:[%s759_s2 + $0x18] sm:$0xff]  ;;  %469 = vmatpush.xpose.msk.msra.mxu2 %vm260_vm0, %v259_v0  ;;  %v252_v3 = vld [vmem:[%s759_s2 + $0x10] sm:$0xff]  ;;  %451 = vmatpush.xpose.msk.msra.mxu0 %vm260_vm0, %v259_v0  ;;  %v251_v5 = vld [vmem:[%s759_s2 + $0x8] sm:$0xff]  ;;  %s448_s23 = sshll.u32 %s770_s9, 3 }
  0x15   : > { %473 = vmatpush.xpose.msk.msra.mxu3 %vm302_vm1, %v253_v1  ;;  %457 = vmatpush.xpose.msk.msra.mxu1 %vm302_vm1, %v253_v1  ;;  %v256_v6 = vld [vmem:[%s760_s3] sm:$0xff]  ;;  %s245_s9 = scalar_lea.vmem %s758_s1, %s448_s23  ;;  %s239_s12 = scalar_lea.vmem %s757_s0, %s448_s23  ;;  %v345_v19 = vld [vmem:[%s761_s4 + $0x8] sm:$0xff] }
  0x16   : > { %v250_v7 = vld [vmem:[%s759_s2] sm:$0xff]  ;;  %v255_v8 = vld [vmem:[%s245_s9 + $0x8] sm:$0xff]  ;;  %s446_s23 = sshll.u32 %s232_s15, 4 }
  0x17   : > { %v249_v9 = vld [vmem:[%s239_s12 + $0x8] sm:$0xff]  ;;  %v254_v10 = vld [vmem:[%s245_s9] sm:$0xff]  ;;  %s234_s7 = scalar_lea.vmem [#allocation2], %s446_s23  ;;  %s367_s9 = sshll.u32 %s364_s6, 4  ;;  %s368_s9 = int_to_ptr.hbm [resolvable:$true] %s367_s9 }
  0x18   : > { %470 = vmatpush.xpose.msk.msra.mxu2 %vm260_vm0, %v258_v2  ;;  %452 = vmatpush.xpose.msk.msra.mxu0 %vm260_vm0, %v258_v2  ;;  %v248_v11 = vld [vmem:[%s239_s12] sm:$0xff]  ;;  %s365_s8 = sshll.u32 %s234_s7, 4  ;;  %s536_s10 = sshra.s32 %s368_s9, 4  ;;  %s366_s8 = int_to_ptr.vmem [resolvable:$true] %s365_s8  ;;  %s537_s10 = int_to_ptr.hbm [resolvable:$true] %s536_s10 }
  0x19   : > { %474 = vmatpush.xpose.msk.msra.mxu3 %vm302_vm1, %v252_v3  ;;  %458 = vmatpush.xpose.msk.msra.mxu1 %vm302_vm1, %v252_v3  ;;  %v344_v14 = vld [vmem:[%s761_s4] sm:$0xff]  ;;  %s538_s11 = scalar_lea.hbm %s537_s10, 16  ;;  %p543_p0 = scmp.lt.s32.totalorder %s537_s10, %s762_s5 }
  0x1a   : > { %p539_p11 = scmp.ne.s32.totalorder %s537_s10, %s538_s11  ;;  %p544_p1 = scmp.lt.s32.totalorder %s542_s14, %s538_s11 }
  0x1c   : > { %471 = vmatpush.xpose.msk.msra.mxu2 %vm260_vm0, %v257_v4  ;;  %453 = vmatpush.xpose.msk.msra.mxu0 %vm260_vm0, %v257_v4  ;;  %p540_p12 = pnand %p539_p11, %p656_p5  ;;  %p545_p2 = por %p544_p1, %p543_p0 }
  0x1d   : > { %475 = vmatpush.xpose.msk.msra.mxu3 %vm302_vm1, %v251_v5  ;;  %459 = vmatpush.xpose.msk.msra.mxu1 %vm302_vm1, %v251_v5 }
  0x1e   : > { %p541_p13 = pneg %p540_p12 }
  0x20   : > { %472 = vmatpush.xpose.msk.msra.mxu2 %vm260_vm0, %v256_v6  ;;  %454 = vmatpush.xpose.msk.msra.mxu0 %vm260_vm0, %v256_v6  ;;  %p546_p3 = pnand %p545_p2, %p541_p13 }
  0x21   : > { %476 = vmatpush.xpose.msk.msra.mxu3 %vm302_vm1, %v250_v7  ;;  %460 = vmatpush.xpose.msk.msra.mxu1 %vm302_vm1, %v250_v7 }
  0x23   : > { %456 = vmatmul.msk.f32.vlgmr.msra.gmra.mxu2 %vm260_vm0, %v255_v8  ;;  %455 = vmatmul.msk.f32.vlgmr.msra.gmra.mxu0 %vm260_vm0, %v254_v10 }
  0x24   : > { %462 = vmatmul.msk.f32.vlgmr.msra.gmra.mxu3 %vm302_vm1, %v249_v9  ;;  %461 = vmatmul.msk.f32.vlgmr.msra.gmra.mxu1 %vm302_vm1, %v248_v11 }
  0xa0   : > { %v296_v12 = vpop.f32.mrf.mxu0 }
  0xa1   : > { %v338_v13 = vpop.f32.mrf.mxu1 }
  0xa2   : > { %v339_v15 = vadd.f32 %v338_v13, %v296_v12 }
  0xa4   : > { %v346_v16 = vadd.f32 %v344_v14, %v339_v15 }
  0xa6   : > { %v299_v17 = vpop.f32.mrf.mxu2  ;;  %518 = vtanh.f32 %v346_v16 }
  0xa7   : > { %v341_v18 = vpop.f32.mrf.mxu3 }
  0xa8   : > { %v342_v20 = vadd.f32 %v341_v18, %v299_v17 }
  0xaa   : > { %v347_v21 = vadd.f32 %v345_v19, %v342_v20 }
  0xac   : > { %520 = vtanh.f32 %v347_v21  ;;  %v519_v22 = vpop.eup %518 }
  0xad   : > { %350 = vst.msk [vmem:[%s234_s7] sm:$0xff] %vm260_vm0, %v519_v22 }
  0xb2   : > { %v521_v23 = vpop.eup %520 }
  0xb3   : > { %351 = vst.msk [vmem:[%s234_s7 + $0x8] sm:$0xff] %vm260_vm0, %v521_v23 }
  0xb4   : > { %549 = shalt.err (!%p546_p3)
}
  0xb5   : > { %s586_s15 = smov 128   ;;  %s587_s23 = smov 8  }
  0xb6   : > { %477 = dma.vmem_to_hbm [thread:$0]  (%p656_p5), %s366_s8, 256, %s368_s9, %s353_s22, %s586_s15, %s586_s15, %s587_s23  }
  0xb7 PF: > { %p483_p4 = scmp.ge.s32.totalorder %s584_s21, 2  ;;  %s382_s25 = sand.u32 1, %s572_s18  }
  0xb8   : > { %s383_s26 = scalar_lea.sflag [#allocation3], %s382_s25 }
  0xb9   : > { %p480_p7 = pnand %p483_p4, %p660_p6 }
  0xbb   : > { %p481_p8 = pneg %p480_p7 }
  0xbd   : > { %567 = dma.done.wait (%p481_p8), %s383_s26, 256  }
  0xbe   : > { %569 = vsyncadd (%p481_p8), %s383_s26, 4294967040  ;;  %p15_p9 = scmp.ge.s32.totalorder %s643_s24, 4   ;;  %s765_s18 = smov %s576_s19 }
  0xbf   : > { %s766_s19 = smov %s580_s20  ;;  %s767_s20 = smov %s654_s27 }
  0xc0   : > { %s768_s21 = smov %s643_s24  ;;  %17 = sbr.rel (!%p15_p9) target bundleno = 3 (0x3), region = 78 }
  0xc5   :  { %389 = vsyncpa [#allocation3], 1 }
  0xc6   :  { %391 = vsyncpa [#allocation3 + $0x1], 1 }

</bundles_post_ra>
